<compile_context>
chip_gen: v7x
topology: tpu7x:2x2x1
jax: 0.10.0
libtpu: 0.0.40
codegen_flags: <defaults>
</compile_context>

<pallas_src>
import functools

import jax
import jax.numpy as jnp
from jax.experimental import pallas as pl
from jax.experimental.pallas import tpu as pltpu


def _round_up(x, m):
    return (x + m - 1) // m * m


def _temporal_block_kernel(x_ref, w1_ref, b1_ref, w2_ref, b2_ref, *rest,
                           K, dilation, padding, TL, use_downsample):
    # x_ref   : (1, TL, Cin_p)     current time tile (native dtype)
    # w1_ref  : (K*Cin_p, Cout_p)  tap-major folded conv1 weight
    # w2_ref  : (K*Cout_p, Cout_p) tap-major folded conv2 weight
    # wd_ref  : (Cin_p, Cout_p)    1x1 downsample weight (only if use_downsample)
    # out_ref : (1, TL, Cout_p)
    # xh_ref / h1h_ref : (padding, C) causal history carried across time tiles
    idx = 0
    if use_downsample:
        wd_ref, bd_ref = rest[0], rest[1]
        idx = 2
    out_ref = rest[idx]
    if padding > 0:
        xh_ref, h1h_ref = rest[idx + 1], rest[idx + 2]

    lt = pl.program_id(1)
    x = x_ref[0]                                            # (TL, Cin_p)

    if padding > 0:
        @pl.when(lt == 0)
        def _():                                            # new sequence: zero causal history
            xh_ref[...] = jnp.zeros_like(xh_ref)
            h1h_ref[...] = jnp.zeros_like(h1h_ref)
        xfull = jnp.concatenate([xh_ref[...], x], axis=0)   # (padding + TL, Cin_p)
    else:
        xfull = x

    # ---- conv1 (+ chomp) as a single folded matmul, f32 accumulate on MXU ----
    taps = [xfull[t * dilation:t * dilation + TL, :] for t in range(K)]
    xcat = jnp.concatenate(taps, axis=-1) if K > 1 else taps[0]   # (TL, K*Cin_p)
    acc1 = jnp.dot(xcat, w1_ref[...], preferred_element_type=jnp.float32)
    h1 = jnp.maximum(acc1 + b1_ref[...].astype(jnp.float32), 0.0).astype(x.dtype)
    # dropout1: identity (eval-mode)
    # TODO(synk): training-mode dropout RNG mask not implemented (eval semantics).

    # ---- conv2 (+ chomp) over h1 with causal history, folded matmul ----
    if padding > 0:
        h1full = jnp.concatenate([h1h_ref[...], h1], axis=0)      # (padding + TL, Cout_p)
    else:
        h1full = h1
    taps = [h1full[t * dilation:t * dilation + TL, :] for t in range(K)]
    hcat = jnp.concatenate(taps, axis=-1) if K > 1 else taps[0]   # (TL, K*Cout_p)
    acc2 = jnp.dot(hcat, w2_ref[...], preferred_element_type=jnp.float32)
    h2 = jnp.maximum(acc2 + b2_ref[...].astype(jnp.float32), 0.0)
    # dropout2: identity (eval-mode)

    # ---- residual (1x1 conv downsample if channel counts differ) ----
    if use_downsample:
        res = jnp.dot(x, wd_ref[...], preferred_element_type=jnp.float32)
        res = res + bd_ref[...].astype(jnp.float32)
    else:
        res = x.astype(jnp.float32)

    out_ref[0] = jnp.maximum(h2 + res, 0.0).astype(out_ref.dtype)

    # ---- carry last `padding` rows of x / h1 into the next time tile ----
    if padding > 0:
        xh_ref[...] = xfull[TL:TL + padding, :]
        h1h_ref[...] = h1full[TL:TL + padding, :]


def temporal_block_forward(x, params, *, kernel_size, dilation, padding,
                           time_tile=None):
    """x: (N, C_in, L) in PyTorch NCL layout. Returns (N, C_out, L)."""
    W1, b1, W2, b2, Wd, bd = params
    N, Cin, L = x.shape
    Cout = W1.shape[0]
    K = kernel_size
    use_downsample = Wd is not None

    cin_p = _round_up(Cin, 128)
    cout_p = _round_up(Cout, 128)

    # Time tile: largest aligned tile dividing L (bounds VMEM for v7x's 64 MiB).
    if time_tile is not None:
        assert L % time_tile == 0
        TL = time_tile
    else:
        TL = L
        for cand in (1024, 512, 256, 128, 64, 32, 16, 8):
            if L % cand == 0:
                TL = cand
                break

    # NCL -> NLC, channels zero-padded to lane width (multiple of 128).
    x_nlc = jnp.transpose(x, (0, 2, 1))
    x_nlc = jnp.pad(x_nlc, ((0, 0), (0, 0), (0, cin_p - Cin)))

    def fold_weight(W, cin_pad):
        # PyTorch (Cout, Cin, K) -> tap-major folded (K*Cin_pad, Cout_p).
        co, ci, k = W.shape
        w = jnp.transpose(W, (2, 1, 0))                           # (K, Cin, Cout)
        w = jnp.pad(w, ((0, 0), (0, cin_pad - ci), (0, cout_p - co)))
        return w.reshape(k * cin_pad, cout_p)

    def pad_bias(b):
        return jnp.pad(b, (0, cout_p - Cout)).reshape(1, cout_p)

    w1_f = fold_weight(W1, cin_p)
    w2_f = fold_weight(W2, cout_p)
    b1_p = pad_bias(b1)
    b2_p = pad_bias(b2)

    args = [x_nlc, w1_f, b1_p, w2_f, b2_p]
    in_specs = [
        pl.BlockSpec((1, TL, cin_p), lambda n, lt: (n, lt, 0)),
        pl.BlockSpec((K * cin_p, cout_p), lambda n, lt: (0, 0)),   # resident
        pl.BlockSpec((1, cout_p), lambda n, lt: (0, 0)),
        pl.BlockSpec((K * cout_p, cout_p), lambda n, lt: (0, 0)),  # resident
        pl.BlockSpec((1, cout_p), lambda n, lt: (0, 0)),
    ]
    if use_downsample:
        wd_p = jnp.pad(jnp.transpose(Wd[:, :, 0], (1, 0)),
                       ((0, cin_p - Cin), (0, cout_p - Cout)))
        bd_p = pad_bias(bd)
        args += [wd_p, bd_p]
        in_specs += [
            pl.BlockSpec((cin_p, cout_p), lambda n, lt: (0, 0)),
            pl.BlockSpec((1, cout_p), lambda n, lt: (0, 0)),
        ]

    scratch_shapes = []
    if padding > 0:
        scratch_shapes = [pltpu.VMEM((padding, cin_p), x.dtype),
                          pltpu.VMEM((padding, cout_p), x.dtype)]

    kernel = functools.partial(
        _temporal_block_kernel,
        K=K, dilation=dilation, padding=padding, TL=TL,
        use_downsample=use_downsample)

    out_nlc = pl.pallas_call(
        kernel,
        out_shape=jax.ShapeDtypeStruct((N, L, cout_p), x.dtype),
        grid_spec=pltpu.PrefetchScalarGridSpec(
            num_scalar_prefetch=0,
            grid=(N, L // TL),
            in_specs=in_specs,
            out_specs=pl.BlockSpec((1, TL, cout_p), lambda n, lt: (n, lt, 0)),
            scratch_shapes=scratch_shapes,
        ),
        compiler_params=pltpu.CompilerParams(
            # Batch elements are independent -> megacore-shardable on v7x.
            # Time tiles carry causal history in scratch -> sequential.
            dimension_semantics=("parallel", "arbitrary")),
    )(*args)

    return jnp.transpose(out_nlc[:, :, :Cout], (0, 2, 1))          # back to NCL


def ref_temporal_block(x, params, *, kernel_size, dilation, padding):
    """Pure-JAX reference with identical semantics (eval-mode dropout)."""
    W1, b1, W2, b2, Wd, bd = params
    L = x.shape[-1]

    def conv1d(inp, w, b, dil, pad):
        y = jax.lax.conv_general_dilated(
            inp, w, window_strides=(1,), padding=[(pad, pad)],
            rhs_dilation=(dil,), dimension_numbers=("NCH", "OIH", "NCH"))
        return y + b[None, :, None]

    out = conv1d(x, W1, b1, dilation, padding)[..., :L]            # conv1 + chomp1
    out = jnp.maximum(out, 0.0)                                    # relu1 (dropout1 = id)
    out = conv1d(out, W2, b2, dilation, padding)[..., :L]          # conv2 + chomp2
    out = jnp.maximum(out, 0.0)                                    # relu2 (dropout2 = id)
    res = x if Wd is None else conv1d(x, Wd, bd, 1, 0)
    return jnp.maximum(out + res, 0.0)


if __name__ == "__main__":
    K, stride, dilation = 3, 1, 2
    padding = (K - 1) * dilation                                   # causal TCN padding

    key = jax.random.PRNGKey(0)
    kx1, kp1, kx2, kp2 = jax.random.split(key, 4)

    def make_params(k, cin, cout, with_downsample):
        k1, kb1, k2, kb2, kd, kbd = jax.random.split(k, 6)
        s1 = 1.0 / (cin * K) ** 0.5
        s2 = 1.0 / (cout * K) ** 0.5
        sd = 1.0 / cin ** 0.5
        W1 = jax.random.uniform(k1, (cout, cin, K), jnp.float32, -s1, s1)
        b1 = jax.random.uniform(kb1, (cout,), jnp.float32, -s1, s1)
        W2 = jax.random.uniform(k2, (cout, cout, K), jnp.float32, -s2, s2)
        b2 = jax.random.uniform(kb2, (cout,), jnp.float32, -s2, s2)
        if with_downsample:
            Wd = jax.random.uniform(kd, (cout, cin, 1), jnp.float32, -sd, sd)
            bd = jax.random.uniform(kbd, (cout,), jnp.float32, -sd, sd)
        else:
            Wd, bd = None, None
        return (W1, b1, W2, b2, Wd, bd)

    # Case 1: Cin != Cout -> 1x1 downsample residual, single time tile.
    N, Cin, Cout, L = 2, 4, 8, 16
    x = jax.random.normal(kx1, (N, Cin, L), jnp.float32)
    params = make_params(kp1, Cin, Cout, True)
    out = jax.block_until_ready(temporal_block_forward(
        x, params, kernel_size=K, dilation=dilation, padding=padding))
    ref = ref_temporal_block(x, params, kernel_size=K, dilation=dilation,
                             padding=padding)
    assert out.shape == (N, Cout, L), out.shape
    assert jnp.allclose(out, ref, rtol=1e-5, atol=1e-5), (
        float(jnp.max(jnp.abs(out - ref))))

    # Case 2: Cin == Cout -> identity residual (no downsample operands),
    # time axis split into 4 tiles to exercise the causal-history carry.
    Cin2 = Cout2 = 8
    L2 = 32
    x2 = jax.random.normal(kx2, (N, Cin2, L2), jnp.float32)
    params2 = make_params(kp2, Cin2, Cout2, False)
    out2 = jax.block_until_ready(temporal_block_forward(
        x2, params2, kernel_size=K, dilation=dilation, padding=padding,
        time_tile=8))
    ref2 = ref_temporal_block(x2, params2, kernel_size=K, dilation=dilation,
                              padding=padding)
    assert out2.shape == (N, Cout2, L2), out2.shape
    assert jnp.allclose(out2, ref2, rtol=1e-5, atol=1e-5), (
        float(jnp.max(jnp.abs(out2 - ref2))))

    print("KERNEL_OK")
</pallas_src>

<mosaic_0001>
module attributes {stable_mosaic.version = 11 : i64} {
  func.func @_temporal_block_kernel(%arg0: i32, %arg1: i32, %arg2: memref<1x16x128xf32, #tpu.memory_space<vmem>>, %arg3: memref<384x128xf32, #tpu.memory_space<vmem>>, %arg4: memref<1x128xf32, #tpu.memory_space<vmem>>, %arg5: memref<384x128xf32, #tpu.memory_space<vmem>>, %arg6: memref<1x128xf32, #tpu.memory_space<vmem>>, %arg7: memref<128x128xf32, #tpu.memory_space<vmem>>, %arg8: memref<1x128xf32, #tpu.memory_space<vmem>>, %arg9: memref<1x16x128xf32, #tpu.memory_space<vmem>>, %arg10: memref<4x128xf32, #tpu.memory_space<vmem>>, %arg11: memref<4x128xf32, #tpu.memory_space<vmem>>) attributes {dimension_semantics = [#tpu.dimension_semantics<parallel>, #tpu.dimension_semantics<arbitrary>], iteration_bounds = array<i64: 2, 1>, scalar_prefetch = 0 : i64, scratch_operands = 2 : i64, tpu.core_type = #tpu.core_type<tc>, window_params = [{transform_indices = @transform_0, window_bounds = array<i64: 1, 16, 128>}, {pipeline_mode = #tpu.pipeline_mode<synchronous>, transform_indices = @transform_1, window_bounds = array<i64: 384, 128>}, {pipeline_mode = #tpu.pipeline_mode<synchronous>, transform_indices = @transform_2, window_bounds = array<i64: 1, 128>}, {pipeline_mode = #tpu.pipeline_mode<synchronous>, transform_indices = @transform_3, window_bounds = array<i64: 384, 128>}, {pipeline_mode = #tpu.pipeline_mode<synchronous>, transform_indices = @transform_4, window_bounds = array<i64: 1, 128>}, {pipeline_mode = #tpu.pipeline_mode<synchronous>, transform_indices = @transform_5, window_bounds = array<i64: 128, 128>}, {pipeline_mode = #tpu.pipeline_mode<synchronous>, transform_indices = @transform_6, window_bounds = array<i64: 1, 128>}, {transform_indices = @transform_7, window_bounds = array<i64: 1, 16, 128>}]} {
    %c0 = arith.constant 0 : index
    %c0_0 = arith.constant 0 : index
    %c0_1 = arith.constant 0 : index
    %0 = vector.load %arg2[%c0, %c0_0, %c0_1] : memref<1x16x128xf32, #tpu.memory_space<vmem>>, vector<1x16x128xf32>
    %1 = vector.shape_cast %0 : vector<1x16x128xf32> to vector<16x128xf32>
    %c0_i32 = arith.constant 0 : i32
    %2 = arith.cmpi eq, %arg1, %c0_i32 : i32
    %3 = arith.extui %2 : i1 to i32
    %c0_i32_2 = arith.constant 0 : i32
    %4 = arith.cmpi ne, %3, %c0_i32_2 : i32
    scf.if %4 {
      %cst_31 = arith.constant 0.000000e+00 : f32
      %46 = vector.broadcast %cst_31 : f32 to vector<4x128xf32>
      %c0_32 = arith.constant 0 : index
      %c0_33 = arith.constant 0 : index
      %47 = vector.load %arg10[%c0_32, %c0_33] : memref<4x128xf32, #tpu.memory_space<vmem>>, vector<4x128xf32>
      tpu.vector_store %arg10[%c0_32, %c0_33], %46 {strides = array<i32>} : memref<4x128xf32, #tpu.memory_space<vmem>>, vector<4x128xf32>,
      %cst_34 = arith.constant 0.000000e+00 : f32
      %48 = vector.broadcast %cst_34 : f32 to vector<4x128xf32>
      %c0_35 = arith.constant 0 : index
      %c0_36 = arith.constant 0 : index
      %49 = vector.load %arg11[%c0_35, %c0_36] : memref<4x128xf32, #tpu.memory_space<vmem>>, vector<4x128xf32>
      tpu.vector_store %arg11[%c0_35, %c0_36], %48 {strides = array<i32>} : memref<4x128xf32, #tpu.memory_space<vmem>>, vector<4x128xf32>,
    } else {
    }
    %c0_3 = arith.constant 0 : index
    %c0_4 = arith.constant 0 : index
    %5 = vector.load %arg10[%c0_3, %c0_4] : memref<4x128xf32, #tpu.memory_space<vmem>>, vector<4x128xf32>
    %6 = tpu.concatenate %5, %1 in 0 : vector<4x128xf32>, vector<16x128xf32> -> vector<20x128xf32>
    %7 = vector.extract_strided_slice %6 {offsets = [0, 0], sizes = [16, 128], strides = [1, 1]} : vector<20x128xf32> to vector<16x128xf32>
    %8 = vector.extract_strided_slice %6 {offsets = [2, 0], sizes = [16, 128], strides = [1, 1]} : vector<20x128xf32> to vector<16x128xf32>
    %9 = vector.extract_strided_slice %6 {offsets = [4, 0], sizes = [16, 128], strides = [1, 1]} : vector<20x128xf32> to vector<16x128xf32>
    %10 = tpu.concatenate %7, %8, %9 in 1 : vector<16x128xf32>, vector<16x128xf32>, vector<16x128xf32> -> vector<16x384xf32>
    %c0_5 = arith.constant 0 : index
    %c0_6 = arith.constant 0 : index
    %11 = vector.load %arg3[%c0_5, %c0_6] : memref<384x128xf32, #tpu.memory_space<vmem>>, vector<384x128xf32>
    %cst = arith.constant dense<0.000000e+00> : vector<16x128xf32>
    %12 = tpu.matmul %10, %11, %cst {dimension_numbers = #tpu.dot_dimension_numbers<[1], [0], [0], [1], [0, 0, 1, 1], [], []>} : vector<16x384xf32>, vector<384x128xf32>, vector<16x128xf32> -> vector<16x128xf32>
    %c0_7 = arith.constant 0 : index
    %c0_8 = arith.constant 0 : index
    %13 = vector.load %arg4[%c0_7, %c0_8] : memref<1x128xf32, #tpu.memory_space<vmem>>, vector<1x128xf32>
    %14 = vector.broadcast %13 : vector<1x128xf32> to vector<16x128xf32>
    %15 = arith.addf %12, %14 : vector<16x128xf32>
    %cst_9 = arith.constant 0.000000e+00 : f32
    %16 = vector.broadcast %cst_9 : f32 to vector<16x128xf32>
    %17 = arith.maximumf %15, %16 : vector<16x128xf32>
    %c0_10 = arith.constant 0 : index
    %c0_11 = arith.constant 0 : index
    %18 = vector.load %arg11[%c0_10, %c0_11] : memref<4x128xf32, #tpu.memory_space<vmem>>, vector<4x128xf32>
    %19 = tpu.concatenate %18, %17 in 0 : vector<4x128xf32>, vector<16x128xf32> -> vector<20x128xf32>
    %20 = vector.extract_strided_slice %19 {offsets = [0, 0], sizes = [16, 128], strides = [1, 1]} : vector<20x128xf32> to vector<16x128xf32>
    %21 = vector.extract_strided_slice %19 {offsets = [2, 0], sizes = [16, 128], strides = [1, 1]} : vector<20x128xf32> to vector<16x128xf32>
    %22 = vector.extract_strided_slice %19 {offsets = [4, 0], sizes = [16, 128], strides = [1, 1]} : vector<20x128xf32> to vector<16x128xf32>
    %23 = tpu.concatenate %20, %21, %22 in 1 : vector<16x128xf32>, vector<16x128xf32>, vector<16x128xf32> -> vector<16x384xf32>
    %c0_12 = arith.constant 0 : index
    %c0_13 = arith.constant 0 : index
    %24 = vector.load %arg5[%c0_12, %c0_13] : memref<384x128xf32, #tpu.memory_space<vmem>>, vector<384x128xf32>
    %cst_14 = arith.constant dense<0.000000e+00> : vector<16x128xf32>
    %25 = tpu.matmul %23, %24, %cst_14 {dimension_numbers = #tpu.dot_dimension_numbers<[1], [0], [0], [1], [0, 0, 1, 1], [], []>} : vector<16x384xf32>, vector<384x128xf32>, vector<16x128xf32> -> vector<16x128xf32>
    %c0_15 = arith.constant 0 : index
    %c0_16 = arith.constant 0 : index
    %26 = vector.load %arg6[%c0_15, %c0_16] : memref<1x128xf32, #tpu.memory_space<vmem>>, vector<1x128xf32>
    %27 = vector.broadcast %26 : vector<1x128xf32> to vector<16x128xf32>
    %28 = arith.addf %25, %27 : vector<16x128xf32>
    %cst_17 = arith.constant 0.000000e+00 : f32
    %29 = vector.broadcast %cst_17 : f32 to vector<16x128xf32>
    %30 = arith.maximumf %28, %29 : vector<16x128xf32>
    %c0_18 = arith.constant 0 : index
    %c0_19 = arith.constant 0 : index
    %31 = vector.load %arg7[%c0_18, %c0_19] : memref<128x128xf32, #tpu.memory_space<vmem>>, vector<128x128xf32>
    %cst_20 = arith.constant dense<0.000000e+00> : vector<16x128xf32>
    %32 = tpu.matmul %1, %31, %cst_20 {dimension_numbers = #tpu.dot_dimension_numbers<[1], [0], [0], [1], [0, 0, 1, 1], [], []>} : vector<16x128xf32>, vector<128x128xf32>, vector<16x128xf32> -> vector<16x128xf32>
    %c0_21 = arith.constant 0 : index
    %c0_22 = arith.constant 0 : index
    %33 = vector.load %arg8[%c0_21, %c0_22] : memref<1x128xf32, #tpu.memory_space<vmem>>, vector<1x128xf32>
    %34 = vector.broadcast %33 : vector<1x128xf32> to vector<16x128xf32>
    %35 = arith.addf %32, %34 : vector<16x128xf32>
    %36 = arith.addf %30, %35 : vector<16x128xf32>
    %cst_23 = arith.constant 0.000000e+00 : f32
    %37 = vector.broadcast %cst_23 : f32 to vector<16x128xf32>
    %38 = arith.maximumf %36, %37 : vector<16x128xf32>
    %c0_24 = arith.constant 0 : index
    %c0_25 = arith.constant 0 : index
    %c0_26 = arith.constant 0 : index
    %39 = vector.load %arg9[%c0_24, %c0_25, %c0_26] : memref<1x16x128xf32, #tpu.memory_space<vmem>>, vector<1x16x128xf32>
    %40 = vector.shape_cast %39 : vector<1x16x128xf32> to vector<16x128xf32>
    %41 = vector.shape_cast %38 : vector<16x128xf32> to vector<1x16x128xf32>
    tpu.vector_store %arg9[%c0_24, %c0_25, %c0_26], %41 {strides = array<i32>} : memref<1x16x128xf32, #tpu.memory_space<vmem>>, vector<1x16x128xf32>,
    %42 = vector.extract_strided_slice %6 {offsets = [16, 0], sizes = [4, 128], strides = [1, 1]} : vector<20x128xf32> to vector<4x128xf32>
    %c0_27 = arith.constant 0 : index
    %c0_28 = arith.constant 0 : index
    %43 = vector.load %arg10[%c0_27, %c0_28] : memref<4x128xf32, #tpu.memory_space<vmem>>, vector<4x128xf32>
    tpu.vector_store %arg10[%c0_27, %c0_28], %42 {strides = array<i32>} : memref<4x128xf32, #tpu.memory_space<vmem>>, vector<4x128xf32>,
    %44 = vector.extract_strided_slice %19 {offsets = [16, 0], sizes = [4, 128], strides = [1, 1]} : vector<20x128xf32> to vector<4x128xf32>
    %c0_29 = arith.constant 0 : index
    %c0_30 = arith.constant 0 : index
    %45 = vector.load %arg11[%c0_29, %c0_30] : memref<4x128xf32, #tpu.memory_space<vmem>>, vector<4x128xf32>
    tpu.vector_store %arg11[%c0_29, %c0_30], %44 {strides = array<i32>} : memref<4x128xf32, #tpu.memory_space<vmem>>, vector<4x128xf32>,
    return
  }
  func.func @transform_0(%arg0: i32, %arg1: i32) -> (i32, i32, i32) {
    %c0_i32 = arith.constant 0 : i32
    %c0_i32_0 = arith.constant 0 : i32
    return %arg0, %arg1, %c0_i32 : i32, i32, i32
  }
  func.func @transform_1(%arg0: i32, %arg1: i32) -> (i32, i32) {
    %c0_i32 = arith.constant 0 : i32
    %c0_i32_0 = arith.constant 0 : i32
    %c0_i32_1 = arith.constant 0 : i32
    return %c0_i32, %c0_i32_0 : i32, i32
  }
  func.func @transform_2(%arg0: i32, %arg1: i32) -> (i32, i32) {
    %c0_i32 = arith.constant 0 : i32
    %c0_i32_0 = arith.constant 0 : i32
    %c0_i32_1 = arith.constant 0 : i32
    return %c0_i32, %c0_i32_0 : i32, i32
  }
  func.func @transform_3(%arg0: i32, %arg1: i32) -> (i32, i32) {
    %c0_i32 = arith.constant 0 : i32
    %c0_i32_0 = arith.constant 0 : i32
    %c0_i32_1 = arith.constant 0 : i32
    return %c0_i32, %c0_i32_0 : i32, i32
  }
  func.func @transform_4(%arg0: i32, %arg1: i32) -> (i32, i32) {
    %c0_i32 = arith.constant 0 : i32
    %c0_i32_0 = arith.constant 0 : i32
    %c0_i32_1 = arith.constant 0 : i32
    return %c0_i32, %c0_i32_0 : i32, i32
  }
  func.func @transform_5(%arg0: i32, %arg1: i32) -> (i32, i32) {
    %c0_i32 = arith.constant 0 : i32
    %c0_i32_0 = arith.constant 0 : i32
    %c0_i32_1 = arith.constant 0 : i32
    return %c0_i32, %c0_i32_0 : i32, i32
  }
  func.func @transform_6(%arg0: i32, %arg1: i32) -> (i32, i32) {
    %c0_i32 = arith.constant 0 : i32
    %c0_i32_0 = arith.constant 0 : i32
    %c0_i32_1 = arith.constant 0 : i32
    return %c0_i32, %c0_i32_0 : i32, i32
  }
  func.func @transform_7(%arg0: i32, %arg1: i32) -> (i32, i32, i32) {
    %c0_i32 = arith.constant 0 : i32
    %c0_i32_0 = arith.constant 0 : i32
    return %arg0, %arg1, %c0_i32 : i32, i32, i32
  }
}

</mosaic_0001>

<bundles_post_ra>
// kernel: tpu_custom_call.1
= control target key start
LH: loop header
LB: loop body
LE: loop exit
PB: predicated region body
PF: predicated region fallthrough
CT: control target
= control target key end

     0   :  { %s2193_s0 = inlined_call_operand.hbm [shape: f32[2,16,128], index: 0, kind: input, shape index: {}]   ;;  %s2194_s1 = inlined_call_operand.hbm [shape: f32[384,128], index: 1, kind: input, shape index: {}]   ;;  %s2195_s2 = inlined_call_operand.vmem [shape: f32[1,128], index: 2, kind: input, shape index: {}]   ;;  %s2196_s3 = inlined_call_operand.hbm [shape: f32[384,128], index: 3, kind: input, shape index: {}]   ;;  %s2197_s4 = inlined_call_operand.vmem [shape: f32[1,128], index: 4, kind: input, shape index: {}]   ;;  %s2198_s5 = inlined_call_operand.hbm [shape: f32[128,128], index: 5, kind: input, shape index: {}]   ;;  %s2199_s6 = inlined_call_operand.vmem [shape: f32[1,128], index: 6, kind: input, shape index: {}]   ;;  %s2200_s7 = inlined_call_operand.hbm [shape: f32[2,16,128], index: 7, kind: output, shape index: {}]  }
   0x1   :  { %2208 = sst [smem:[#allocation19_spill]] %s2199_s6 }
   0x2   :  { %2209 = sst [smem:[#allocation20_spill]] %s2200_s7 }
   0x3   :  { %12 = vsyncpa [#allocation5], 0 }
   0x4   :  { %14 = vsyncpa [#allocation5 + $0x1], 0 }
   0x5   :  { %15 = vsyncpa [#allocation8], 0 }
   0x6   :  { %16 = vsyncpa [#allocation11], 0 }
   0x7   :  { %17 = vsyncpa [#allocation6], 0 }
   0x8   :  { %19 = vsyncpa [#allocation6 + $0x1], 0  ;;  %s1848_s24 = smov 0   ;;  %s1850_s25 = smov 0  }
   0x9   :  { %s1852_s26 = smov 0   ;;  %s1854_s27 = smov 0  }
   0xa   :  { %s1856_s28 = smov 0   ;;  %s1858_s29 = smov 0  }
   0xb LB: > { %2210 = sst [smem:[#allocation17_spill]] %s1776_s24  ;;  %s1073_s30 = sadd.s32 4294967295, %s1796_s29   ;;  %s1796_s29 = sphi %s1858_s29, %s25_s29   ;;  %s1792_s28 = sphi %s1856_s28, %s2235_s28   ;;  %s1788_s27 = sphi %s1854_s27, %s2234_s27   ;;  %s1784_s26 = sphi %s1852_s26, %s2233_s26   ;;  %s1780_s25 = sphi %s1850_s25, %s2232_s25   ;;  %s1776_s24 = sphi %s1848_s24, %s2231_s24  }
   0xc   : > { %s1074_s8 = sadd.s32 4294967294, %s1796_s29   ;;  %p59_p0 = scmp.ne.s32.totalorder %s1780_s25, %s1776_s24 }
   0xd   : > { %p1882_p1 = scmp.eq.s32.totalorder %s1073_s30, 0  ;;  %p1886_p2 = scmp.eq.s32.totalorder %s1073_s30, 1 }
   0xe   : > { %p217_p3 = scmp.eq.s32.totalorder %s1074_s8, 1  ;;  %p1075_p5 = scmp.ge.s32.totalorder %s1796_s29, 1 }
   0xf   : > { %s2211_s9 = scalar_select %p1882_p1, 1, 0 }
  0x10   : > { %s2212_s10 = scalar_select %p1886_p2, 1, 0 }
  0x11   : > { %p1892_p4 = por %p1882_p1, %p59_p0  ;;  %p1897_p6 = por %p217_p3, %p59_p0 }
  0x12   : > { %p224_p7 = scmp.lt.s32.totalorder %s1796_s29, 3  ;;  %s1798_s14 = smov [#allocation7]  }
  0x13   : > { %s2213_s11 = scalar_select %p1892_p4, 1, 0 }
  0x14   : > { %s2214_s12 = scalar_select %p1897_p6, 1, 0 }
  0x15   : > { %p1902_p8 = pnand %p1075_p5, %p224_p7  ;;  %s236_s15 = sshll.u32 %s1798_s14, 4  ;;  %s1906_s15 = int_to_ptr.vmem [resolvable:$true] %s236_s15 }
  0x16   : > { %2215 = sst [smem:[#allocation18_spill]] %s2214_s12  ;;  %s1799_s17 = smov [#allocation9]  }
  0x17   : > { %s2216_s13 = scalar_select %p1902_p8, 1, 0 }
  0x18   : > { %p1510_p9 = pneg %p1902_p8  ;;  %s252_s18 = sshll.u32 %s1799_s17, 4  ;;  %s1917_s18 = int_to_ptr.vmem [resolvable:$true] %s252_s18 }
  0x19   : > { %s1800_s19 = smov [#allocation10]   ;;  %s1592_s23 = scalar_lea.hbm %s2194_s1, 6144 }
  0x1a   : > { %p1913_p11 = pnand %p1510_p9, %p1882_p1  ;;  %s1919_s20 = sshll.u32 %s1800_s19, 4  ;;  %s269_s20 = int_to_ptr.vmem [resolvable:$true] %s1919_s20 }
  0x1b   : > { %p1593_p12 = scmp.ne.s32.totalorder %s2194_s1, %s1592_s23  ;;  %p1599_p5 = scmp.lt.u32.totalorder %s1592_s23, %s2194_s1 }
  0x1c   : > { %p1929_p13 = pneg %p1913_p11 }
  0x1e   : > { %p1595_p0 = pnand %p1929_p13, %p1593_p12 }
  0x20   : > { %p1596_p3 = pneg %p1595_p0 }
  0x22   : > { %p1601_p7 = pnand %p1599_p5, %p1596_p3 }
  0x24   : > { %1604 = shalt.err (!%p1601_p7)
}
  0x25   : > { %s1605_s21 = scalar_lea.vmem %s1906_s15, 6144  ;;  %p1613_p1 = scmp.lt.s32.totalorder %s1906_s15, %s1906_s15 }
  0x26   : > { %p1606_p9 = scmp.ne.s32.totalorder %s1906_s15, %s1605_s21  ;;  %p1614_p4 = scmp.lt.s32.totalorder %s1605_s21, %s1605_s21 }
  0x28   : > { %p1608_p10 = pnand %p1606_p9, %p1929_p13  ;;  %p1615_p12 = por %p1614_p4, %p1613_p1 }
  0x2a   : > { %p1609_p6 = pneg %p1608_p10 }
  0x2c   : > { %p1616_p0 = pnand %p1615_p12, %p1609_p6 }
  0x2e   : > { %1619 = shalt.err (!%p1616_p0)
}
  0x2f   : > { %s1801_s22 = smov 128   ;;  %s1802_s23 = smov 8  }
  0x30   : > { %1513 = dma.hbm_to_vmem [thread:$0]  (!%p1913_p11), %s2194_s1, 6144, %s1906_s15, [#allocation8], %s1801_s22, %s1801_s22, %s1802_s23  }
  0x31   : > { %s1620_s21 = scalar_lea.hbm %s2196_s3, 6144 }
  0x32   : > { %p1621_p1 = scmp.ne.s32.totalorder %s2196_s3, %s1620_s21  ;;  %p1627_p10 = scmp.lt.u32.totalorder %s1620_s21, %s2196_s3 }
  0x34   : > { %p1623_p4 = pnand %p1621_p1, %p1929_p13 }
  0x36   : > { %p1624_p6 = pneg %p1623_p4 }
  0x38   : > { %p1629_p3 = pnand %p1627_p10, %p1624_p6 }
  0x3a   : > { %1632 = shalt.err (!%p1629_p3)
}
  0x3b   : > { %s1633_s15 = scalar_lea.vmem %s1917_s18, 6144  ;;  %p1641_p12 = scmp.lt.s32.totalorder %s1917_s18, %s1917_s18 }
  0x3c   : > { %p1634_p5 = scmp.ne.s32.totalorder %s1917_s18, %s1633_s15  ;;  %p1642_p0 = scmp.lt.s32.totalorder %s1633_s15, %s1633_s15 }
  0x3e   : > { %p1636_p7 = pnand %p1634_p5, %p1929_p13  ;;  %p1643_p1 = por %p1642_p0, %p1641_p12 }
  0x40   : > { %p1637_p9 = pneg %p1636_p7 }
  0x42   : > { %p1644_p4 = pnand %p1643_p1, %p1637_p9 }
  0x44   : > { %1647 = shalt.err (!%p1644_p4)
}
  0x45   : > { %1516 = dma.hbm_to_vmem [thread:$0]  (!%p1913_p11), %s2196_s3, 6144, %s1917_s18, [#allocation8], %s1801_s22, %s1801_s22, %s1802_s23  }
  0x46   : > { %s1648_s30 = scalar_lea.hbm %s2198_s5, 2048 }
  0x47   : > { %p1649_p6 = scmp.ne.s32.totalorder %s2198_s5, %s1648_s30  ;;  %p1655_p5 = scmp.lt.u32.totalorder %s1648_s30, %s2198_s5 }
  0x49   : > { %p1651_p10 = pnand %p1649_p6, %p1929_p13 }
  0x4b   : > { %p1652_p3 = pneg %p1651_p10 }
  0x4d   : > { %p1657_p7 = pnand %p1655_p5, %p1652_p3 }
  0x4f   : > { %1660 = shalt.err (!%p1657_p7)
}
  0x50   : > { %s1661_s15 = scalar_lea.vmem %s269_s20, 2048  ;;  %p1669_p1 = scmp.lt.s32.totalorder %s269_s20, %s269_s20 }
  0x51   : > { %p1662_p9 = scmp.ne.s32.totalorder %s269_s20, %s1661_s15  ;;  %p1670_p4 = scmp.lt.s32.totalorder %s1661_s15, %s1661_s15 }
  0x53   : > { %p1664_p12 = pnand %p1662_p9, %p1929_p13  ;;  %p1671_p8 = por %p1670_p4, %p1669_p1 }
  0x55   : > { %p1665_p0 = pneg %p1664_p12 }
  0x57   : > { %p1672_p2 = pnand %p1671_p8, %p1665_p0 }
  0x59   : > { %1675 = shalt.err (!%p1672_p2)
}
  0x5a   : > { %1519 = dma.hbm_to_vmem [thread:$0]  (!%p1913_p11), %s2198_s5, 2048, %s269_s20, [#allocation11], %s1801_s22, %s1801_s22, %s1802_s23  }
  0x5b   : > { %s46_s14 = sadd.s32 1, %s1784_s26  ;;  %s37_s16 = sadd.s32 1, %s1792_s28 }
  0x5c   : > { %p53_p2 = scmp.ne.s32.totalorder %s1784_s26, %s1780_s25  ;;  %p39_p8 = scmp.ge.s32.totalorder %s37_s16, 2 }
  0x5d   : > { %p54_p13 = scmp.eq.s32.totalorder %s1796_s29, 0  ;;  %p2219_p6 = scmp.ne.s32.totalorder %s2212_s10, 0 }
  0x5e   : > { %p1531_p3 = scmp.lt.s32.totalorder %s1796_s29, 2  ;;  %s2237_s16 = smov (%p39_p8, %s37_s16), 0 }
  0x5f   : > { %p2008_p10 = por %p2219_p6, %p53_p2  ;;  %p55_p5 = por %p54_p13, %p53_p2 }
  0x60   : > { %s285_s24 = sand.u32 1, %s1784_s26   ;;  %s41_s12 = ssub.s32 %s1792_s28, %s2237_s16 }
  0x61   : > { %p44_p7 = scmp.eq.s32.totalorder %s41_s12, 0  ;;  %s1080_s20 = sshll.u32 %s285_s24, 4 }
  0x62   : > { %s1097_s30 = sshll.u32 %s1792_s28, 8  ;;  %s289_s21 = scalar_lea.vmem [#allocation4], %s1080_s20 }
  0x63   : > { %s2020_s8 = scalar_select %p44_p7, %s1784_s26, %s46_s14  }
  0x64   : > { %s2025_s10 = scalar_lea.hbm %s2193_s0, %s1097_s30  ;;  %s298_s15 = sshll.u32 %s289_s21, 4  ;;  %s2027_s15 = int_to_ptr.vmem [resolvable:$true] %s298_s15 }
  0x65   : > { %p2031_p11 = pnand %p1531_p3, %p55_p5  ;;  %s2035_s6 = scalar_lea.sflag [#allocation5], %s285_s24 }
  0x66   : > { %s1676_s14 = scalar_lea.hbm %s2025_s10, 256  ;;  %s1681_s30 = scalar_lea.hbm %s2193_s0, 512 }
  0x67   : > { %p1677_p9 = scmp.ne.s32.totalorder %s2025_s10, %s1676_s14  ;;  %p1678_p12 = pneg %p2031_p11 }
  0x68   : > { %p1682_p4 = scmp.lt.u32.totalorder %s2025_s10, %s2193_s0  ;;  %p1683_p2 = scmp.lt.u32.totalorder %s1681_s30, %s1676_s14 }
  0x69   : > { %p1679_p0 = pnand %p1678_p12, %p1677_p9  ;;  %p1685_p13 = scmp.lt.u32.totalorder %s1676_s14, %s2025_s10 }
  0x6a   : > { %p1684_p8 = por %p1683_p2, %p1682_p4 }
  0x6b   : > { %p1680_p1 = pneg %p1679_p0 }
  0x6c   : > { %p1686_p6 = por %p1685_p13, %p1684_p8 }
  0x6e   : > { %p1687_p3 = pnand %p1686_p6, %p1680_p1 }
  0x70   : > { %1690 = shalt.err (!%p1687_p3)
}
  0x71   : > { %s1691_s24 = scalar_lea.vmem %s2027_s15, 256  ;;  %s1803_s21 = smov [#allocation4]  }
  0x72   : > { %p1692_p5 = scmp.ne.s32.totalorder %s2027_s15, %s1691_s24  ;;  %s1696_s12 = sshll.u32 %s1803_s21, 4  ;;  %s1697_s12 = int_to_ptr.vmem [resolvable:$false] %s1696_s12 }
  0x73   : > { %s1698_s20 = scalar_lea.vmem %s1697_s12, 512  ;;  %p1699_p0 = scmp.lt.s32.totalorder %s2027_s15, %s1697_s12 }
  0x74   : > { %p1694_p7 = pnand %p1692_p5, %p1678_p12  ;;  %p1700_p4 = scmp.lt.s32.totalorder %s1698_s20, %s1691_s24 }
  0x76   : > { %p1695_p9 = pneg %p1694_p7  ;;  %p1701_p2 = por %p1700_p4, %p1699_p0 }
  0x78   : > { %p1702_p8 = pnand %p1701_p2, %p1695_p9 }
  0x7a   : > { %1705 = shalt.err (!%p1702_p8)
}
  0x7b   : > { %1523 = dma.hbm_to_vmem [thread:$0]  (!%p2031_p11), %s2025_s10, 256, %s2027_s15, %s2035_s6, %s1801_s22, %s1801_s22, %s1802_s23  }
  0x7c   : > { %p2222_p12 = scmp.ne.s32.totalorder %s2216_s13, 0 }
  0x7d   : > { %s2069_s14 = sand.u32 (!%p2222_p12), 1, %s1780_s25   ;;  %p2223_p1 = scmp.ne.s32.totalorder (!%p2222_p12), %s2213_s11, 0 }
  0x7e   : > { %310 = sbr.rel (%p2222_p12) target bundleno = 672 (0x2a0), region = 48  ;;  %s1084_s30 = sshll.u32 (!%p2222_p12), %s2069_s14, 4 }
  0x7f   : > { %s313_s17 = scalar_lea.sflag (!%p2222_p12), [#allocation5], %s2069_s14  ;;  %s2075_s18 = scalar_lea.vmem (!%p2222_p12), [#allocation4], %s1084_s30 }
  0x85   : > { %1759 = dma.done.wait (%p2223_p1), %s313_s17, 256  }
  0x86   : > { %1761 = vsyncadd (%p2223_p1), %s313_s17, 4294967040  ;;  %p2224_p11 = scmp.ne.s32.totalorder %s2211_s9, 0 }
  0x88   : > { %1763 = dma.done.wait (%p2224_p11), [#allocation8], 12288  }
  0x89   : > { %1765 = vsyncadd (%p2224_p11), [#allocation8], 4294955008 }
  0x8a   : > { %1767 = dma.done.wait (%p2224_p11), [#allocation11], 2048  }
  0x8b   : > { %1769 = vsyncadd (%p2224_p11), [#allocation11], 4294965248  ;;  %v1804_v0 = vmov 0.0   ;;  %v412_v1 = vld [vmem:[#allocation7 + $0x80] sm:$0xff]  ;;  %v413_v2 = vld [vmem:[#allocation7 + $0x88] sm:$0xff]  ;;  %vm372_vm0 = vcmask 1043456  }
  0x8c   : > { %367 = vst [vmem:[#allocation2] sm:$0xf] %v1804_v0  ;;  %368 = vst [vmem:[#allocation3] sm:$0xf] %v1804_v0  ;;  %v396_v3 = vld [vmem:[#allocation7] sm:$0xff]  ;;  %v1334_v4 = vpack.c.bf16 %v413_v2, %v412_v1  ;;  %v397_v5 = vld [vmem:[#allocation7 + $0x8] sm:$0xff] }
  0x8d   : > { %v414_v6 = vld [vmem:[#allocation7 + $0x90] sm:$0xff]  ;;  %v415_v7 = vld [vmem:[#allocation7 + $0x98] sm:$0xff]  ;;  %v1336_v8 = vpack.c.bf16 %v397_v5, %v396_v3  ;;  %v428_v10 = vld [vmem:[#allocation7 + $0x100] sm:$0xff]  ;;  %vm381_vm1 = vcmask 1045504   ;;  %s2225_s15 = sld [smem:[#allocation19_spill]]  ;;  %s358_s6 = scalar_lea.vmem [#allocation12], %s1084_s30 }
  0x8e   : > { %v1338_v9 = vpack.c.bf16 %v415_v7, %v414_v6  ;;  %v429_v11 = vld [vmem:[#allocation7 + $0x108] sm:$0xff]  ;;  %v398_v12 = vld [vmem:[#allocation7 + $0x10] sm:$0xff]  ;;  %1335 = vmatprep.subr.bf16.mxu0 %v1334_v4  ;;  %v399_v14 = vld [vmem:[#allocation7 + $0x18] sm:$0xff]  ;;  %s957_s19 = sshll.u32 %s358_s6, 4  ;;  %s1098_s24 = sshll.u32 %s1788_s27, 8  ;;  %s2139_s19 = int_to_ptr.vmem [resolvable:$true] %s957_s19 }
  0x8f   : > { %v1366_v13 = vpack.c.bf16 %v429_v11, %v428_v10  ;;  %v416_v15 = vld [vmem:[#allocation7 + $0xa0] sm:$0xff]  ;;  %v417_v16 = vld [vmem:[#allocation7 + $0xa8] sm:$0xff]  ;;  %1337 = vmatpush3.bf16.msra.mxu0 %v1336_v8  ;;  %v1340_v17 = vpack.c.bf16 %v399_v14, %v398_v12  ;;  %v430_v18 = vld [vmem:[#allocation7 + $0x110] sm:$0xff]  ;;  %s2226_s20 = sld [smem:[#allocation20_spill]]  ;;  %s942_s30 = scalar_lea.sflag [#allocation6], %s2069_s14 }
  0x90   : > { %v431_v19 = vld [vmem:[#allocation7 + $0x118] sm:$0xff]  ;;  %1339 = vmatprep.subr.bf16.mxu0 %v1338_v9  ;;  %v1342_v20 = vpack.c.bf16 %v417_v16, %v416_v15  ;;  %v400_v22 = vld [vmem:[#allocation7 + $0x20] sm:$0xff]  ;;  %v401_v23 = vld [vmem:[#allocation7 + $0x28] sm:$0xff]  ;;  %s1805_s27 = smov [#allocation12]  }
  0x91   : > { %1367 = vmatprep.subr.bf16.mxu1 %v1366_v13  ;;  %v1370_v21 = vpack.c.bf16 %v431_v19, %v430_v18  ;;  %v418_v24 = vld [vmem:[#allocation7 + $0xb0] sm:$0xff]  ;;  %v419_v25 = vld [vmem:[#allocation7 + $0xb8] sm:$0xff]  ;;  %v432_v26 = vld [vmem:[#allocation7 + $0x120] sm:$0xff]  ;;  %v1344_v29 = vpack.c.bf16 %v401_v23, %v400_v22  ;;  %s1710_s9 = sshll.u32 %s1805_s27, 4  ;;  %s1711_s9 = int_to_ptr.vmem [resolvable:$false] %s1710_s9 }
  0x92   : > { %1369 = vmatpush3.bf16.msra.mxu1 %v1366_v13  ;;  %v433_v27 = vld [vmem:[#allocation7 + $0x128] sm:$0xff]  ;;  %v434_v30 = vld [vmem:[#allocation7 + $0x130] sm:$0xff]  ;;  %v435_v31 = vld [vmem:[#allocation7 + $0x138] sm:$0xff]  ;;  %v1346_v32 = vpack.c.bf16 %v419_v25, %v418_v24  ;;  %s1712_s11 = scalar_lea.vmem %s1711_s9, 512  ;;  %p1713_p5 = scmp.lt.s32.totalorder %s2139_s19, %s1711_s9 }
  0x93   : > { %1371 = vmatprep.subr.bf16.mxu1 %v1370_v21  ;;  %v1374_v28 = vpack.c.bf16 %v433_v27, %v432_v26  ;;  %1341 = vmatpush3.bf16.msra.mxu0 %v1340_v17  ;;  %v402_v33 = vld [vmem:[#allocation7 + $0x30] sm:$0xff]  ;;  %v403_v34 = vld [vmem:[#allocation7 + $0x38] sm:$0xff]  ;;  %v420_v35 = vld [vmem:[#allocation7 + $0xc0] sm:$0xff]  ;;  %v1378_v37 = vpack.c.bf16 %v435_v31, %v434_v30 }
  0x94   : > { %1343 = vmatprep.subr.bf16.mxu0 %v1342_v20  ;;  %v421_v36 = vld [vmem:[#allocation7 + $0xc8] sm:$0xff]  ;;  %v1348_v38 = vpack.c.bf16 %v403_v34, %v402_v33  ;;  %v436_v39 = vld [vmem:[#allocation7 + $0x140] sm:$0xff]  ;;  %v422_v44 = vld [vmem:[#allocation7 + $0xd0] sm:$0xff] }
  0x95   : > { %v437_v40 = vld [vmem:[#allocation7 + $0x148] sm:$0xff]  ;;  %v1350_v41 = vpack.c.bf16 %v421_v36, %v420_v35  ;;  %v404_v42 = vld [vmem:[#allocation7 + $0x40] sm:$0xff]  ;;  %v423_v45 = vld [vmem:[#allocation7 + $0xd8] sm:$0xff]  ;;  %s2144_s17 = scalar_lea.hbm %s2226_s20, %s1098_s24 }
  0x96   : > { %1373 = vmatpush3.bf16.msra.mxu1 %v1370_v21  ;;  %v405_v43 = vld [vmem:[#allocation7 + $0x48] sm:$0xff]  ;;  %v438_v46 = vld [vmem:[#allocation7 + $0x150] sm:$0xff]  ;;  %v1382_v47 = vpack.c.bf16 %v437_v40, %v436_v39  ;;  %v439_v48 = vld [vmem:[#allocation7 + $0x158] sm:$0xff]  ;;  %v1354_v55 = vpack.c.bf16 %v423_v45, %v422_v44 }
  0x97   : > { %1375 = vmatprep.subr.bf16.mxu1 %v1374_v28  ;;  %1345 = vmatpush3.bf16.msra.mxu0 %v1344_v29  ;;  %v2090_v49 = vld [vmem:[%s2075_s18] sm:$0xff]  ;;  %v2093_v50 = vld [vmem:[%s2075_s18 + $0x8] sm:$0xff]  ;;  %v1352_v51 = vpack.c.bf16 %v405_v43, %v404_v42  ;;  %v1386_v60 = vpack.c.bf16 %v439_v48, %v438_v46  ;;  %s1706_s18 = scalar_lea.vmem %s2139_s19, 256 }
  0x98   : > { %1347 = vmatprep.subr.bf16.mxu0 %v1346_v32  ;;  %v369_v52 = vld [vmem:[#allocation2] sm:$0xf]  ;;  %v373_v53 = vrot.slane %v2090_v49, 4  ;;  %v2097_v54 = vrot.slane %v2093_v50, 4  ;;  %v406_v56 = vld [vmem:[#allocation7 + $0x50] sm:$0xff]  ;;  %v424_v58 = vld [vmem:[#allocation7 + $0xe0] sm:$0xff]  ;;  %p1707_p13 = scmp.ne.s32.totalorder %s2139_s19, %s1706_s18  ;;  %p1714_p7 = scmp.lt.s32.totalorder %s1712_s11, %s1706_s18 }
  0x99   : > { %v407_v57 = vld [vmem:[#allocation7 + $0x58] sm:$0xff]  ;;  %v425_v59 = vld [vmem:[#allocation7 + $0xe8] sm:$0xff]  ;;  %v440_v4 = vld [vmem:[#allocation7 + $0x160] sm:$0xff] }
  0x9a   : > { %1377 = vmatpush3.bf16.msra.mxu1 %v1374_v28  ;;  %v2101_v61 = vsel %vm372_vm0, %v373_v53, %v2097_v54  ;;  %v2104_v62 = vsel %vm372_vm0, %v369_v52, %v373_v53  ;;  %939 = vst [vmem:[#allocation2] sm:$0xf] %v2097_v54  ;;  %v1356_v3 = vpack.c.bf16 %v407_v57, %v406_v56  ;;  %v441_v5 = vld [vmem:[#allocation7 + $0x168] sm:$0xff]  ;;  %v408_v7 = vld [vmem:[#allocation7 + $0x60] sm:$0xff]  ;;  %v426_v11 = vld [vmem:[#allocation7 + $0xf0] sm:$0xff]  ;;  %v385_v26 = vrot.slane %v2097_v54, 2  ;;  %p1708_p6 = pnand %p1707_p13, %p2008_p10  ;;  %p1715_p9 = por %p1714_p7, %p1713_p5 }
  0x9b   : > { %1379 = vmatprep.subr.bf16.mxu1 %v1378_v37  ;;  %1349 = vmatpush3.bf16.msra.mxu0 %v1348_v38  ;;  %v382_v63 = vrot.slane %v2104_v62, 2  ;;  %v383_v0 = vrot.slane %v2101_v61, 2  ;;  %v389_v1 = vrot.slane %v2104_v62, 4  ;;  %v390_v2 = vrot.slane %v2101_v61, 4  ;;  %v409_v8 = vld [vmem:[#allocation7 + $0x68] sm:$0xff]  ;;  %v427_v12 = vld [vmem:[#allocation7 + $0xf8] sm:$0xff] }
  0x9c   : > { %1351 = vmatprep.subr.bf16.mxu0 %v1350_v41  ;;  %v1358_v6 = vpack.c.bf16 %v425_v59, %v424_v58  ;;  %v1390_v13 = vpack.c.bf16 %v441_v5, %v440_v4  ;;  %v1360_v14 = vpack.c.bf16 %v409_v8, %v408_v7  ;;  %v442_v15 = vld [vmem:[#allocation7 + $0x170] sm:$0xff]  ;;  %v443_v16 = vld [vmem:[#allocation7 + $0x178] sm:$0xff]  ;;  %v1362_v17 = vpack.c.bf16 %v427_v12, %v426_v11  ;;  %v644_v20 = vld [vmem:[#allocation9 + $0x80] sm:$0xff]  ;;  %p1709_p3 = pneg %p1708_p6 }
  0x9d   : > { %v384_v9 = vsel %vm381_vm1, %v382_v63, %v383_v0  ;;  %v391_v10 = vsel %vm372_vm0, %v389_v1, %v390_v2  ;;  %v410_v18 = vld [vmem:[#allocation7 + $0x70] sm:$0xff]  ;;  %v411_v19 = vld [vmem:[#allocation7 + $0x78] sm:$0xff]  ;;  %v645_v21 = vld [vmem:[#allocation9 + $0x88] sm:$0xff]  ;;  %v1394_v22 = vpack.c.bf16 %v443_v16, %v442_v15  ;;  %v392_v30 = vrot.slane %v2097_v54, 4 }
  0x9e   : > { %1381 = vmatpush3.bf16.msra.mxu1 %v1378_v37  ;;  %515 = vmatprep.mubr.f32.mxu0 %v384_v9  ;;  %v1364_v23 = vpack.c.bf16 %v411_v19, %v410_v18  ;;  %v660_v24 = vld [vmem:[#allocation9 + $0x100] sm:$0xff]  ;;  %v661_v25 = vld [vmem:[#allocation9 + $0x108] sm:$0xff]  ;;  %v1398_v27 = vpack.c.bf16 %v645_v21, %v644_v20  ;;  %v646_v31 = vld [vmem:[#allocation9 + $0x90] sm:$0xff]  ;;  %v386_v37 = vsel %vm381_vm1, %v383_v0, %v385_v26  ;;  %p1716_p0 = pnand %p1715_p9, %p1709_p3 }
  0x9f   : > { %1383 = vmatprep.subr.bf16.mxu1 %v1382_v47  ;;  %1353 = vmatpush3.bf16.msra.mxu0 %v1352_v51  ;;  %v628_v28 = vld [vmem:[#allocation9] sm:$0xff]  ;;  %v629_v29 = vld [vmem:[#allocation9 + $0x8] sm:$0xff]  ;;  %v647_v32 = vld [vmem:[#allocation9 + $0x98] sm:$0xff]  ;;  %v1430_v33 = vpack.c.bf16 %v661_v25, %v660_v24  ;;  %v393_v41 = vsel %vm372_vm0, %v390_v2, %v392_v30 }
  0xa0   : > { %1355 = vmatprep.subr.bf16.mxu0 %v1354_v55  ;;  %1261 = vmatprep.mubr.f32.mxu1 %v391_v10  ;;  %v1400_v34 = vpack.c.bf16 %v629_v29, %v628_v28  ;;  %v662_v35 = vld [vmem:[#allocation9 + $0x110] sm:$0xff]  ;;  %v663_v36 = vld [vmem:[#allocation9 + $0x118] sm:$0xff]  ;;  %v1402_v38 = vpack.c.bf16 %v647_v32, %v646_v31  ;;  %v648_v42 = vld [vmem:[#allocation9 + $0xa0] sm:$0xff] }
  0xa1   : > { %v630_v39 = vld [vmem:[#allocation9 + $0x10] sm:$0xff]  ;;  %v631_v40 = vld [vmem:[#allocation9 + $0x18] sm:$0xff]  ;;  %v649_v43 = vld [vmem:[#allocation9 + $0xa8] sm:$0xff]  ;;  %v1434_v44 = vpack.c.bf16 %v663_v36, %v662_v35 }
  0xa2   : > { %1385 = vmatpush3.bf16.msra.mxu1 %v1382_v47  ;;  %v1404_v45 = vpack.c.bf16 %v631_v40, %v630_v39  ;;  %v664_v46 = vld [vmem:[#allocation9 + $0x120] sm:$0xff]  ;;  %v665_v47 = vld [vmem:[#allocation9 + $0x128] sm:$0xff]  ;;  %v1406_v48 = vpack.c.bf16 %v649_v43, %v648_v42  ;;  %v650_v55 = vld [vmem:[#allocation9 + $0xb0] sm:$0xff] }
  0xa3   : > { %1387 = vmatprep.subr.bf16.mxu1 %v1386_v60  ;;  %1357 = vmatpush3.bf16.msra.mxu0 %v1356_v3  ;;  %v632_v51 = vld [vmem:[#allocation9 + $0x20] sm:$0xff]  ;;  %v633_v52 = vld [vmem:[#allocation9 + $0x28] sm:$0xff]  ;;  %v1438_v53 = vpack.c.bf16 %v665_v47, %v664_v46  ;;  %v651_v56 = vld [vmem:[#allocation9 + $0xb8] sm:$0xff] }
  0xa4   : > { %1359 = vmatprep.subr.bf16.mxu0 %v1358_v6  ;;  %v1408_v54 = vpack.c.bf16 %v633_v52, %v632_v51  ;;  %v1410_v57 = vpack.c.bf16 %v651_v56, %v650_v55  ;;  %v634_v58 = vld [vmem:[#allocation9 + $0x30] sm:$0xff]  ;;  %v635_v59 = vld [vmem:[#allocation9 + $0x38] sm:$0xff]  ;;  %v653_v1 = vld [vmem:[#allocation9 + $0xc8] sm:$0xff] }
  0xa5   : > { %v667_v63 = vld [vmem:[#allocation9 + $0x138] sm:$0xff]  ;;  %v636_v3 = vld [vmem:[#allocation9 + $0x40] sm:$0xff]  ;;  %v637_v4 = vld [vmem:[#allocation9 + $0x48] sm:$0xff] }
  0xa6   : > { %1389 = vmatpush3.bf16.msra.mxu1 %v1386_v60  ;;  %v666_v60 = vld [vmem:[#allocation9 + $0x130] sm:$0xff]  ;;  %v668_v5 = vld [vmem:[#allocation9 + $0x140] sm:$0xff]  ;;  %v1416_v6 = vpack.c.bf16 %v637_v4, %v636_v3  ;;  %v669_v7 = vld [vmem:[#allocation9 + $0x148] sm:$0xff] }
  0xa7   : > { %1391 = vmatprep.subr.bf16.mxu1 %v1390_v13  ;;  %1361 = vmatpush3.bf16.msra.mxu0 %v1360_v14  ;;  %v1442_v0 = vpack.c.bf16 %v667_v63, %v666_v60  ;;  %v1446_v8 = vpack.c.bf16 %v669_v7, %v668_v5  ;;  %v654_v9 = vld [vmem:[#allocation9 + $0xd0] sm:$0xff]  ;;  %v655_v10 = vld [vmem:[#allocation9 + $0xd8] sm:$0xff]  ;;  %v656_v18 = vld [vmem:[#allocation9 + $0xe0] sm:$0xff] }
  0xa8   : > { %1363 = vmatprep.subr.bf16.mxu0 %v1362_v17  ;;  %v1418_v11 = vpack.c.bf16 %v655_v10, %v654_v9  ;;  %v638_v12 = vld [vmem:[#allocation9 + $0x50] sm:$0xff]  ;;  %v671_v16 = vld [vmem:[#allocation9 + $0x158] sm:$0xff]  ;;  %v657_v19 = vld [vmem:[#allocation9 + $0xe8] sm:$0xff] }
  0xa9   : > { %v670_v14 = vld [vmem:[#allocation9 + $0x150] sm:$0xff]  ;;  %v1422_v20 = vpack.c.bf16 %v657_v19, %v656_v18  ;;  %v640_v21 = vld [vmem:[#allocation9 + $0x60] sm:$0xff]  ;;  %v673_v25 = vld [vmem:[#allocation9 + $0x168] sm:$0xff] }
  0xaa   : > { %1393 = vmatpush3.bf16.msra.mxu1 %v1390_v13  ;;  %v639_v13 = vld [vmem:[#allocation9 + $0x58] sm:$0xff]  ;;  %v1450_v17 = vpack.c.bf16 %v671_v16, %v670_v14  ;;  %v642_v30 = vld [vmem:[#allocation9 + $0x70] sm:$0xff]  ;;  %v835_v36 = vld [vmem:[#allocation10] sm:$0xff] }
  0xab   : > { %1395 = vmatprep.subr.bf16.mxu1 %v1394_v22  ;;  %1365 = vmatpush3.bf16.msra.mxu0 %v1364_v23  ;;  %v1420_v15 = vpack.c.bf16 %v639_v13, %v638_v12  ;;  %v672_v23 = vld [vmem:[#allocation9 + $0x160] sm:$0xff]  ;;  %v659_v28 = vld [vmem:[#allocation9 + $0xf8] sm:$0xff]  ;;  %v674_v32 = vld [vmem:[#allocation9 + $0x170] sm:$0xff] }
  0xac   : > { %1399 = vmatprep.subr.bf16.mxu0 %v1398_v27  ;;  %v1454_v26 = vpack.c.bf16 %v673_v25, %v672_v23  ;;  %v658_v27 = vld [vmem:[#allocation9 + $0xf0] sm:$0xff]  ;;  %v643_v31 = vld [vmem:[#allocation9 + $0x78] sm:$0xff]  ;;  %v839_v10 = vld [vmem:[#allocation10 + $0x20] sm:$0xff] }
  0xad   : > { %v1426_v29 = vpack.c.bf16 %v659_v28, %v658_v27  ;;  %v603_v56 = vld [vmem:[#allocation3] sm:$0xf]  ;;  %v837_v60 = vld [vmem:[#allocation10 + $0x10] sm:$0xff]  ;;  %v843_v16 = vld [vmem:[#allocation10 + $0x40] sm:$0xff] }
  0xae   : > { %1397 = vmatpush3.bf16.msra.mxu1 %v1394_v22  ;;  %516 = vmatmul.mubr.f32.vlgmr.msra.gmra.mrb[0].mxu0 %v2104_v62  ;;  %v1412_v62 = vpack.c.bf16 %v635_v59, %v634_v58  ;;  %v641_v22 = vld [vmem:[#allocation9 + $0x68] sm:$0xff]  ;;  %v841_v13 = vld [vmem:[#allocation10 + $0x30] sm:$0xff]  ;;  %v842_v14 = vld [vmem:[#allocation10 + $0x38] sm:$0xff] }
  0xaf   : > { %1431 = vmatprep.subr.bf16.mxu1 %v1430_v33  ;;  %520 = vmatprep.mubr.f32.mxu0 %v386_v37  ;;  %v1424_v24 = vpack.c.bf16 %v641_v22, %v640_v21  ;;  %v836_v37 = vld [vmem:[#allocation10 + $0x8] sm:$0xff]  ;;  %v845_v19 = vld [vmem:[#allocation10 + $0x50] sm:$0xff]  ;;  %v847_v22 = vld [vmem:[#allocation10 + $0x60] sm:$0xff] }
  0xb0   : > { %1401 = vmatpush3.bf16.msra.mxu0 %v1400_v34  ;;  %v675_v34 = vld [vmem:[#allocation9 + $0x178] sm:$0xff]  ;;  %v848_v23 = vld [vmem:[#allocation10 + $0x68] sm:$0xff]  ;;  %v849_v25 = vld [vmem:[#allocation10 + $0x70] sm:$0xff] }
  0xb1   : > { %1262 = vmatmul.mubr.f32.vlgmr.msra.gmra.mrb[0].mxu1 %v393_v41  ;;  %1403 = vmatprep.subr.bf16.mxu0 %v1402_v38  ;;  %v1458_v35 = vpack.c.bf16 %v675_v34, %v674_v32  ;;  %v1462_v38 = vpack.c.bf16 %v836_v37, %v835_v36  ;;  %v1089_v41 = vld [vmem:[%s2195_s2] ss:$0 sm:$0xff] }
  0xb2   : > { %1433 = vmatpush3.bf16.msra.mxu1 %v1430_v33  ;;  %521 = vmatmul.mubr.f32.gmra.mrb[2].mxu0 %v2101_v61  ;;  %v652_v61 = vld [vmem:[#allocation9 + $0xc0] sm:$0xff]  ;;  %v1428_v33 = vpack.c.bf16 %v643_v31, %v642_v30  ;;  %v1090_v30 = vld [vmem:[%s2197_s4] ss:$0 sm:$0xff] }
  0xb3   : > { %1435 = vmatprep.subr.bf16.mxu1 %v1434_v44  ;;  %v1414_v2 = vpack.c.bf16 %v653_v1, %v652_v61 }
  0xb4   : > { %1405 = vmatpush3.bf16.msra.mxu0 %v1404_v45 }
  0xb5   : > { %1407 = vmatprep.subr.bf16.mxu0 %v1406_v48 }
  0xb6   : > { %1437 = vmatpush3.bf16.msra.mxu1 %v1434_v44 }
  0xb7   : > { %1439 = vmatprep.subr.bf16.mxu1 %v1438_v53 }
  0xb8   : > { %1409 = vmatpush3.bf16.msra.mxu0 %v1408_v54 }
  0xb9   : > { %1411 = vmatprep.subr.bf16.mxu0 %v1410_v57 }
  0xba   : > { %1441 = vmatpush3.bf16.msra.mxu1 %v1438_v53 }
  0xbb   : > { %1443 = vmatprep.subr.bf16.mxu1 %v1442_v0 }
  0xbc   : > { %1413 = vmatpush3.bf16.msra.mxu0 %v1412_v62  ;;  %v838_v62 = vld [vmem:[#allocation10 + $0x18] sm:$0xff] }
  0xbd   : > { %1415 = vmatprep.subr.bf16.mxu0 %v1414_v2  ;;  %v1466_v5 = vpack.c.bf16 %v838_v62, %v837_v60 }
  0xbe   : > { %1445 = vmatpush3.bf16.msra.mxu1 %v1442_v0 }
  0xbf   : > { %1447 = vmatprep.subr.bf16.mxu1 %v1446_v8 }
  0xc0   : > { %1417 = vmatpush3.bf16.msra.mxu0 %v1416_v6 }
  0xc1   : > { %1419 = vmatprep.subr.bf16.mxu0 %v1418_v11  ;;  %v840_v11 = vld [vmem:[#allocation10 + $0x28] sm:$0xff] }
  0xc2   : > { %1449 = vmatpush3.bf16.msra.mxu1 %v1446_v8  ;;  %v1470_v12 = vpack.c.bf16 %v840_v11, %v839_v10 }
  0xc3   : > { %1451 = vmatprep.subr.bf16.mxu1 %v1450_v17 }
  0xc4   : > { %1421 = vmatpush3.bf16.msra.mxu0 %v1420_v15  ;;  %v1474_v15 = vpack.c.bf16 %v842_v14, %v841_v13 }
  0xc5   : > { %1423 = vmatprep.subr.bf16.mxu0 %v1422_v20  ;;  %v846_v20 = vld [vmem:[#allocation10 + $0x58] sm:$0xff] }
  0xc6   : > { %1453 = vmatpush3.bf16.msra.mxu1 %v1450_v17  ;;  %v844_v17 = vld [vmem:[#allocation10 + $0x48] sm:$0xff]  ;;  %v1482_v21 = vpack.c.bf16 %v846_v20, %v845_v19 }
  0xc7   : > { %1455 = vmatprep.subr.bf16.mxu1 %v1454_v26  ;;  %v1478_v18 = vpack.c.bf16 %v844_v17, %v843_v16 }
  0xc8   : > { %1425 = vmatpush3.bf16.msra.mxu0 %v1424_v24  ;;  %v1486_v24 = vpack.c.bf16 %v848_v23, %v847_v22 }
  0xc9   : > { %1427 = vmatprep.subr.bf16.mxu0 %v1426_v29 }
  0xca   : > { %1457 = vmatpush3.bf16.msra.mxu1 %v1454_v26  ;;  %v850_v26 = vld [vmem:[#allocation10 + $0x78] sm:$0xff] }
  0xcb   : > { %1459 = vmatprep.subr.bf16.mxu1 %v1458_v35 }
  0xcc   : > { %1429 = vmatpush3.bf16.msra.mxu0 %v1428_v33 }
  0xcd   : > { %1463 = vmatprep.subr.bf16.mxu0 %v1462_v38 }
  0xce   : > { %1461 = vmatpush3.bf16.msra.mxu1 %v1458_v35 }
 0x181   : > { %v1131_v39 = vpop.f32.mrb[0].mxu0 }
 0x182   : > { %v1132_v40 = vpop.f32.mrb[1].mxu0 }
 0x183   : > { %v1133_v42 = vadd.f32 %v1132_v40, %v1131_v39 }
 0x184   : > { %v1263_v43 = vpop.f32.mrb[0].mxu1 }
 0x185   : > { %v592_v44 = vpop.f32.mrb[1].mxu1  ;;  %v1134_v45 = vpop.f32.mrb[2].mxu0  ;;  %v518_v46 = vadd.f32 %v1133_v42, %v1089_v41 }
 0x186   : > { %v1135_v47 = vpop.f32.mrb[3].mxu0 }
 0x187   : > { %v1136_v48 = vadd.f32 %v1135_v47, %v1134_v45  ;;  %v593_v51 = vadd.f32 %v592_v44, %v518_v46 }
 0x189   : > { %v523_v52 = vadd.f32 %v1136_v48, %v1089_v41  ;;  %v601_v53 = vmax.f32 %v593_v51, 0.0 }
 0x18b   : > { %v598_v54 = vadd.f32 %v1263_v43, %v523_v52  ;;  %v606_v55 = vrot.slane %v601_v53, 4 }
 0x18d   : > { %v602_v57 = vmax.f32 %v598_v54, 0.0  ;;  %v612_v59 = vsel %vm372_vm0, %v603_v56, %v606_v55 }
 0x18e   : > { %v614_v1 = vrot.slane %v612_v59, 2  ;;  %v621_v3 = vrot.slane %v612_v59, 4 }
 0x18f   : > { %v607_v58 = vrot.slane %v602_v57, 4 }
 0x191   : > { %v608_v63 = vsel %vm372_vm0, %v606_v55, %v607_v58  ;;  %940 = vst [vmem:[#allocation3] sm:$0xf] %v607_v58  ;;  %v624_v0 = vrot.slane %v607_v58, 4  ;;  %v617_v61 = vrot.slane %v607_v58, 2 }
 0x192   : > { %v615_v2 = vrot.slane %v608_v63, 2  ;;  %v622_v4 = vrot.slane %v608_v63, 4 }
 0x194   : > { %v616_v6 = vsel %vm381_vm1, %v614_v1, %v615_v2  ;;  %v623_v7 = vsel %vm372_vm0, %v621_v3, %v622_v4  ;;  %v625_v8 = vsel %vm372_vm0, %v622_v4, %v624_v0  ;;  %v618_v9 = vsel %vm381_vm1, %v615_v2, %v617_v61 }
 0x195   : > { %747 = vmatprep.mubr.f32.mxu0 %v616_v6  ;;  %1296 = vmatprep.mubr.f32.mxu1 %v623_v7 }
 0x196   : > { %748 = vmatmul.mubr.f32.vlgmr.msra.gmra.mrb[4].mxu0 %v612_v59  ;;  %1297 = vmatmul.mubr.f32.vlgmr.msra.gmra.mrb[2].mxu1 %v625_v8 }
 0x197   : > { %1465 = vmatpush3.bf16.msra.mxu0 %v1462_v38  ;;  %752 = vmatprep.mubr.f32.mxu0 %v618_v9 }
 0x198   : > { %1467 = vmatprep.subr.bf16.mxu0 %v1466_v5 }
 0x19a   : > { %753 = vmatmul.mubr.f32.gmra.mrb[6].mxu0 %v608_v63 }
 0x19b   : > { %1469 = vmatpush3.bf16.msra.mxu0 %v1466_v5  ;;  %1331 = vmatprep.mubr.f32.mxu0 %v2090_v49  ;;  %v1490_v49 = vpack.c.bf16 %v850_v26, %v849_v25 }
 0x19c   : > { %1471 = vmatprep.subr.bf16.mxu0 %v1470_v12 }
 0x19f   : > { %1473 = vmatpush3.bf16.msra.mxu0 %v1470_v12 }
 0x1a0   : > { %1475 = vmatprep.subr.bf16.mxu0 %v1474_v15 }
 0x1a3   : > { %1477 = vmatpush3.bf16.msra.mxu0 %v1474_v15 }
 0x1a4   : > { %1479 = vmatprep.subr.bf16.mxu0 %v1478_v18 }
 0x1a7   : > { %1481 = vmatpush3.bf16.msra.mxu0 %v1478_v18 }
 0x1a8   : > { %1483 = vmatprep.subr.bf16.mxu0 %v1482_v21 }
 0x1ab   : > { %1485 = vmatpush3.bf16.msra.mxu0 %v1482_v21 }
 0x1ac   : > { %1487 = vmatprep.subr.bf16.mxu0 %v1486_v24 }
 0x1af   : > { %1489 = vmatpush3.bf16.msra.mxu0 %v1486_v24 }
 0x1b0   : > { %1491 = vmatprep.subr.bf16.mxu0 %v1490_v49 }
 0x1b3   : > { %1493 = vmatpush3.bf16.msra.mxu0 %v1490_v49 }
 0x1b6   : > { %1332 = vmatmul.mubr.f32.vlgmr.msra.gmra.mrb[8].mxu0 %v2093_v50  ;;  %v1091_v50 = vld [vmem:[%s2225_s15] ss:$0 sm:$0xff] }
 0x269   : > { %v1187_v27 = vpop.f32.mrb[4].mxu0  ;;  %v1298_v28 = vpop.f32.mrb[2].mxu1 }
 0x26a   : > { %v1188_v29 = vpop.f32.mrb[5].mxu0  ;;  %v824_v31 = vpop.f32.mrb[3].mxu1 }
 0x26b   : > { %v1189_v32 = vadd.f32 %v1188_v29, %v1187_v27 }
 0x26d   : > { %v750_v33 = vadd.f32 %v1189_v32, %v1090_v30  ;;  %v1190_v34 = vpop.f32.mrb[6].mxu0 }
 0x26e   : > { %v1191_v35 = vpop.f32.mrb[7].mxu0 }
 0x26f   : > { %v825_v36 = vadd.f32 %v824_v31, %v750_v33  ;;  %v1192_v37 = vadd.f32 %v1191_v35, %v1190_v34 }
 0x271   : > { %v755_v38 = vadd.f32 %v1192_v37, %v1090_v30  ;;  %v833_v44 = vmax.f32 %v825_v36, 0.0 }
 0x273   : > { %v830_v39 = vadd.f32 %v1298_v28, %v755_v38 }
 0x275   : > { %v834_v41 = vmax.f32 %v830_v39, 0.0 }
 0x289   : > { %v1333_v40 = vpop.f32.mrb[8].mxu0 }
 0x28a   : > { %v930_v42 = vadd.f32 %v1333_v40, %v1091_v50  ;;  %v924_v43 = vpop.f32.mrb[9].mxu0 }
 0x28b   : > { %v925_v45 = vadd.f32 %v1091_v50, %v924_v43 }
 0x28c   : > { %v934_v46 = vadd.f32 %v930_v42, %v834_v41 }
 0x28d   : > { %v933_v47 = vadd.f32 %v925_v45, %v833_v44 }
 0x28e   : > { %v936_v48 = vmax.f32 %v934_v46, 0.0 }
 0x28f   : > { %v935_v51 = vmax.f32 %v933_v47, 0.0 }
 0x290   : > { %938 = vst [vmem:[%s358_s6 + $0x8] sm:$0xff] %v936_v48 }
 0x291   : > { %937 = vst [vmem:[%s358_s6] sm:$0xff] %v935_v51 }
 0x292   : > { %1719 = shalt.err (!%p1716_p0)
}
 0x293   : > { %s1720_s13 = scalar_lea.hbm %s2144_s17, 256  ;;  %s1724_s10 = scalar_lea.hbm %s2226_s20, 512 }
 0x294   : > { %p1721_p4 = scmp.ne.s32.totalorder %s2144_s17, %s1720_s13  ;;  %p1725_p12 = scmp.lt.u32.totalorder %s2144_s17, %s2226_s20 }
 0x295   : > { %p1726_p1 = scmp.lt.u32.totalorder %s1724_s10, %s1720_s13  ;;  %p1728_p13 = scmp.lt.u32.totalorder %s1720_s13, %s2144_s17 }
 0x296   : > { %p1722_p2 = pnand %p1721_p4, %p2008_p10 }
 0x297   : > { %p1727_p11 = por %p1726_p1, %p1725_p12 }
 0x298   : > { %p1723_p8 = pneg %p1722_p2 }
 0x299   : > { %p1729_p6 = por %p1728_p13, %p1727_p11 }
 0x29b   : > { %p1730_p3 = pnand %p1729_p6, %p1723_p8 }
 0x29d   : > { %1733 = shalt.err (!%p1730_p3)
}
 0x29e   : > { %s1806_s24 = smov 128   ;;  %s1807_s21 = smov 8  }
 0x29f   : > { %1508 = dma.vmem_to_hbm [thread:$0]  (%p2008_p10), %s2139_s19, 256, %s2144_s17, %s942_s30, %s1806_s24, %s1806_s24, %s1807_s21  }
 0x2a0 PF: > { %s2227_s12 = sld [smem:[#allocation17_spill]]  ;;  %s2228_s18 = sld [smem:[#allocation18_spill]] }
 0x2a1   : > { %p2230_p7 = scmp.ge.s32.totalorder %s1796_s29, 2 }
 0x2a6   : > { %s972_s27 = sand.u32 1, %s2227_s12   ;;  %p2229_p5 = scmp.ne.s32.totalorder %s2228_s18, 0 }
 0x2a7   : > { %s973_s9 = scalar_lea.sflag [#allocation6], %s972_s27 }
 0x2a8   : > { %p1525_p9 = pnand %p2230_p7, %p2229_p5 }
 0x2aa   : > { %1771 = dma.done.wait (!%p1525_p9), %s973_s9, 256  }
 0x2ab   : > { %1773 = vsyncadd (!%p1525_p9), %s973_s9, 4294967040  ;;  %s25_s29 = sadd.s32 1, %s1796_s29   ;;  %s2231_s24 = smov %s1780_s25 }
 0x2ac   : > { %p22_p0 = scmp.ge.s32.totalorder %s25_s29, 4   ;;  %s2232_s25 = smov %s1784_s26 }
 0x2ad   : > { %s2233_s26 = smov %s2020_s8  ;;  %s2234_s27 = smov %s1792_s28 }
 0x2ae   : > { %s2235_s28 = smov %s2237_s16  ;;  %24 = sbr.rel (!%p22_p0) target bundleno = 11 (0xb), region = 109 }
 0x2b5   :  { %978 = vsyncpa [#allocation5], 1 }
 0x2b6   :  { %980 = vsyncpa [#allocation5 + $0x1], 1 }
 0x2b7   :  { %981 = vsyncpa [#allocation8], 1 }
 0x2b8   :  { %982 = vsyncpa [#allocation11], 1 }
 0x2b9   :  { %983 = vsyncpa [#allocation6], 1 }
 0x2ba   :  { %985 = vsyncpa [#allocation6 + $0x1], 1 }

</bundles_post_ra>
